<compile_context>
chip_gen: v7x
topology: tpu7x:2x2x1
jax: 0.10.0
libtpu: 0.0.40
codegen_flags: <defaults>
</compile_context>

<pallas_src>
import jax
import jax.numpy as jnp
from jax.experimental import pallas as pl
from jax.experimental.pallas import tpu as pltpu


# ----------------------------- Pallas kernel -------------------------------

def _proj_kernel(x_ref, w_ref, b_ref, o_ref, acc_ref):
    """One (row-tile, vocab-tile) output block, accumulated over K tiles."""
    k = pl.program_id(2)

    @pl.when(k == 0)
    def _init():
        # Fold the bias into the accumulator init (saves an epilogue VPU add).
        acc_ref[...] = jnp.broadcast_to(
            b_ref[...].astype(jnp.float32), acc_ref.shape
        )

    acc_ref[...] += jnp.dot(
        x_ref[...], w_ref[...], preferred_element_type=jnp.float32
    )

    @pl.when(k == pl.num_programs(2) - 1)
    def _finalize():
        o_ref[...] = acc_ref[...].astype(o_ref.dtype)


# ----------------------------- host helpers --------------------------------

def _round_up(x, m):
    return (x + m - 1) // m * m


def _choose_tile(dim, target, align):
    """Pick a tile size <= target.

    Preference order:
      1. the full dimension (full-dim blocks are exempt from the (8,128) rule),
      2. an `align`-multiple that exactly divides `dim` (=> zero padding),
      3. an `align`-multiple (the ragged edge is then zero-padded).
    """
    if dim <= target:
        return dim
    t = max(align, (target // align) * align)
    cand = t
    while cand >= align:
        if dim % cand == 0:
            return cand
        cand -= align
    return t


def _vmem_capacity_bytes():
    try:
        return int(pltpu.get_tpu_info().vmem_capacity_bytes)
    except Exception:
        # Conservative default: v7x has 64 MiB per TensorCore.
        return 64 * 1024 * 1024


# ----------------------------- host wrapper --------------------------------

def projection_forward(x, w, b, *, tm=1024, tn=1024, tk=512,
                       compute_dtype=jnp.bfloat16, out_dtype=None):
    """y = x @ w + b  with x: [B, T, C], w: [C, V], b: [V] -> [B, T, V].

    compute_dtype: storage dtype of the tiles fed to the MXU (bf16 recommended;
    accumulation is always f32).  out_dtype defaults to x.dtype.
    """
    B, T, C = x.shape
    Cw, V = w.shape
    assert C == Cw and b.shape == (V,)

    if out_dtype is None:
        out_dtype = x.dtype
    if compute_dtype is None:
        compute_dtype = x.dtype

    N = B * T
    x2 = x.reshape(N, C).astype(compute_dtype)
    w2 = w.astype(compute_dtype)
    b2 = b.astype(jnp.float32).reshape(1, V)   # folded into the f32 accumulator

    # --- tile selection: prefer exact divisors / full-dim blocks -------------
    tm = _choose_tile(N, tm, 8)
    tn = _choose_tile(V, tn, 128)
    tk = _choose_tile(C, tk, 128)

    in_bytes = jnp.dtype(compute_dtype).itemsize
    out_bytes = jnp.dtype(out_dtype).itemsize

    def working_set(tm_, tn_, tk_):
        return (2 * tm_ * tk_ * in_bytes        # x tiles (double-buffered)
                + 2 * tk_ * tn_ * in_bytes      # w tiles (double-buffered)
                + 2 * tn_ * 4                   # bias tiles
                + 2 * tm_ * tn_ * out_bytes     # output tiles
                + tm_ * tn_ * 4)                # resident f32 accumulator

    vmem_cap = _vmem_capacity_bytes()
    budget = int(vmem_cap * 0.7)
    # Shrink the largest tile dimension until the working set fits per-core VMEM
    # (re-derives the budget for v7x's 64 MiB vs v5e/v6e's 128 MiB automatically).
    while working_set(tm, tn, tk) > budget and max(tm, tn, tk) > 128:
        if tn >= tm and tn >= tk and tn > 128:
            tn = _choose_tile(V, max(128, tn // 2), 128)
        elif tm >= tk and tm > 8:
            tm = _choose_tile(N, max(8, tm // 2), 8)
        elif tk > 128:
            tk = _choose_tile(C, max(128, tk // 2), 128)
        else:
            break

    # --- padding only if a dimension is genuinely ragged ---------------------
    Np, Kp, Vp = _round_up(N, tm), _round_up(C, tk), _round_up(V, tn)
    if (Np, Kp) != (N, C):
        x2 = jnp.pad(x2, ((0, Np - N), (0, Kp - C)))
    if (Kp, Vp) != (C, V):
        # Only hit when C/V are not tile-aligned; typical transformer dims skip it.
        w2 = jnp.pad(w2, ((0, Kp - C), (0, Vp - V)))
    if Vp != V:
        b2 = jnp.pad(b2, ((0, 0), (0, Vp - V)))

    grid = (Np // tm, Vp // tn, Kp // tk)

    ws = working_set(tm, tn, tk)
    vmem_limit = int(min(vmem_cap * 0.8, max(2 * ws, 48 * 1024 * 1024)))

    out = pl.pallas_call(
        _proj_kernel,
        out_shape=jax.ShapeDtypeStruct((Np, Vp), out_dtype),
        grid_spec=pltpu.PrefetchScalarGridSpec(
            num_scalar_prefetch=0,
            grid=grid,
            in_specs=[
                pl.BlockSpec((tm, tk), lambda i, j, k: (i, k)),   # activations
                pl.BlockSpec((tk, tn), lambda i, j, k: (k, j)),   # weights
                pl.BlockSpec((1, tn), lambda i, j, k: (0, j)),    # bias
            ],
            out_specs=pl.BlockSpec((tm, tn), lambda i, j, k: (i, j)),
            scratch_shapes=[pltpu.VMEM((tm, tn), jnp.float32)],
        ),
        compiler_params=pltpu.CompilerParams(
            dimension_semantics=("parallel", "parallel", "arbitrary"),
            vmem_limit_bytes=vmem_limit,
        ),
    )(x2, w2, b2)

    if (Np, Vp) != (N, V):
        out = out[:N, :V]
    return out.reshape(B, T, V)


# ------------------------ pure-JAX reference check --------------------------

def ref_forward(x, w, b):
    return x @ w + b


# --------------------------------- main -------------------------------------

if __name__ == "__main__":
    # Small shapes consistent with the module: x ~ [B, T, d_model].
    B, T, d_model, vocab_size = 2, 8, 32, 512

    key = jax.random.PRNGKey(0)
    kx, kw, kb = jax.random.split(key, 3)

    x = jax.random.normal(kx, (B, T, d_model), jnp.float32)
    # w stored as [d_model, vocab_size] (== torch Linear weight [V, C] transposed)
    w = 0.05 * jax.random.normal(kw, (d_model, vocab_size), jnp.float32)
    b = 0.01 * jax.random.normal(kb, (vocab_size,), jnp.float32)

    ref = ref_forward(x, w, b)

    # fp32 compute path: tight parity with the fp32 reference.
    out_f32 = jax.block_until_ready(
        projection_forward(x, w, b, compute_dtype=jnp.float32))
    assert out_f32.shape == (B, T, vocab_size)
    assert jnp.allclose(out_f32, ref, atol=1e-4, rtol=1e-4), "fp32 mismatch"

    # bf16 compute path (recommended production setting: MXU-native dtype,
    # half the HBM/VMEM traffic, f32 accumulation).
    out_bf16 = jax.block_until_ready(projection_forward(x, w, b))
    assert out_bf16.shape == (B, T, vocab_size)
    assert jnp.allclose(out_bf16, ref, atol=3e-2, rtol=3e-2), "bf16 mismatch"

    print("KERNEL_OK")
</pallas_src>

<mosaic_0001>
module attributes {stable_mosaic.version = 11 : i64} {
  func.func @_proj_kernel(%arg0: i32, %arg1: i32, %arg2: i32, %arg3: memref<16x32xf32, #tpu.memory_space<vmem>>, %arg4: memref<32x512xf32, #tpu.memory_space<vmem>>, %arg5: memref<1x512xf32, #tpu.memory_space<vmem>>, %arg6: memref<16x512xf32, #tpu.memory_space<vmem>>, %arg7: memref<16x512xf32, #tpu.memory_space<vmem>>) attributes {dimension_semantics = [#tpu.dimension_semantics<parallel>, #tpu.dimension_semantics<parallel>, #tpu.dimension_semantics<arbitrary>], iteration_bounds = array<i64: 1, 1, 1>, scalar_prefetch = 0 : i64, scratch_operands = 1 : i64, tpu.core_type = #tpu.core_type<tc>, window_params = [{transform_indices = @transform_0, window_bounds = array<i64: 16, 32>}, {transform_indices = @transform_1, window_bounds = array<i64: 32, 512>}, {transform_indices = @transform_2, window_bounds = array<i64: 1, 512>}, {transform_indices = @transform_3, window_bounds = array<i64: 16, 512>}]} {
    %c0_i32 = arith.constant 0 : i32
    %0 = arith.cmpi eq, %arg2, %c0_i32 : i32
    %1 = arith.extui %0 : i1 to i32
    %c0_i32_0 = arith.constant 0 : i32
    %2 = arith.cmpi ne, %1, %c0_i32_0 : i32
    scf.if %2 {
      %c0_10 = arith.constant 0 : index
      %c0_11 = arith.constant 0 : index
      %12 = vector.load %arg5[%c0_10, %c0_11] : memref<1x512xf32, #tpu.memory_space<vmem>>, vector<1x512xf32>
      %13 = vector.shape_cast %12 : vector<1x512xf32> to vector<1x512xf32>
      %14 = vector.broadcast %13 : vector<1x512xf32> to vector<16x512xf32>
      %c0_12 = arith.constant 0 : index
      %c0_13 = arith.constant 0 : index
      %15 = vector.load %arg7[%c0_12, %c0_13] : memref<16x512xf32, #tpu.memory_space<vmem>>, vector<16x512xf32>
      tpu.vector_store %arg7[%c0_12, %c0_13], %14 {strides = array<i32>} : memref<16x512xf32, #tpu.memory_space<vmem>>, vector<16x512xf32>,
    } else {
    }
    %c0 = arith.constant 0 : index
    %c0_1 = arith.constant 0 : index
    %3 = vector.load %arg7[%c0, %c0_1] : memref<16x512xf32, #tpu.memory_space<vmem>>, vector<16x512xf32>
    %c0_2 = arith.constant 0 : index
    %c0_3 = arith.constant 0 : index
    %4 = vector.load %arg3[%c0_2, %c0_3] : memref<16x32xf32, #tpu.memory_space<vmem>>, vector<16x32xf32>
    %c0_4 = arith.constant 0 : index
    %c0_5 = arith.constant 0 : index
    %5 = vector.load %arg4[%c0_4, %c0_5] : memref<32x512xf32, #tpu.memory_space<vmem>>, vector<32x512xf32>
    %cst = arith.constant dense<0.000000e+00> : vector<16x512xf32>
    %6 = tpu.matmul %4, %5, %cst {dimension_numbers = #tpu.dot_dimension_numbers<[1], [0], [0], [1], [0, 0, 1, 1], [], []>} : vector<16x32xf32>, vector<32x512xf32>, vector<16x512xf32> -> vector<16x512xf32>
    %7 = arith.addf %3, %6 : vector<16x512xf32>
    %c0_6 = arith.constant 0 : index
    %c0_7 = arith.constant 0 : index
    %8 = vector.load %arg7[%c0_6, %c0_7] : memref<16x512xf32, #tpu.memory_space<vmem>>, vector<16x512xf32>
    tpu.vector_store %arg7[%c0_6, %c0_7], %7 {strides = array<i32>} : memref<16x512xf32, #tpu.memory_space<vmem>>, vector<16x512xf32>,
    %c0_i32_8 = arith.constant 0 : i32
    %9 = arith.cmpi eq, %arg2, %c0_i32_8 : i32
    %10 = arith.extui %9 : i1 to i32
    %c0_i32_9 = arith.constant 0 : i32
    %11 = arith.cmpi ne, %10, %c0_i32_9 : i32
    scf.if %11 {
      %c0_10 = arith.constant 0 : index
      %c0_11 = arith.constant 0 : index
      %12 = vector.load %arg7[%c0_10, %c0_11] : memref<16x512xf32, #tpu.memory_space<vmem>>, vector<16x512xf32>
      %c0_12 = arith.constant 0 : index
      %c0_13 = arith.constant 0 : index
      %13 = vector.load %arg6[%c0_12, %c0_13] : memref<16x512xf32, #tpu.memory_space<vmem>>, vector<16x512xf32>
      tpu.vector_store %arg6[%c0_12, %c0_13], %12 {strides = array<i32>} : memref<16x512xf32, #tpu.memory_space<vmem>>, vector<16x512xf32>,
    } else {
    }
    return
  }
  func.func @transform_0(%arg0: i32, %arg1: i32, %arg2: i32) -> (i32, i32) {
    %c0_i32 = arith.constant 0 : i32
    return %arg0, %arg2 : i32, i32
  }
  func.func @transform_1(%arg0: i32, %arg1: i32, %arg2: i32) -> (i32, i32) {
    %c0_i32 = arith.constant 0 : i32
    return %arg2, %arg1 : i32, i32
  }
  func.func @transform_2(%arg0: i32, %arg1: i32, %arg2: i32) -> (i32, i32) {
    %c0_i32 = arith.constant 0 : i32
    %c0_i32_0 = arith.constant 0 : i32
    return %c0_i32, %arg1 : i32, i32
  }
  func.func @transform_3(%arg0: i32, %arg1: i32, %arg2: i32) -> (i32, i32) {
    %c0_i32 = arith.constant 0 : i32
    return %arg0, %arg1 : i32, i32
  }
}

</mosaic_0001>

<bundles_post_ra>
// kernel: tpu_custom_call.1
= control target key start
LH: loop header
LB: loop body
LE: loop exit
PB: predicated region body
PF: predicated region fallthrough
CT: control target
= control target key end

     0   :  { %8 = vsyncpa [#allocation4], 0  ;;  %s490_s0 = inlined_call_operand.hbm [shape: f32[16,32], index: 0, kind: input, shape index: {}]   ;;  %s491_s1 = inlined_call_operand.hbm [shape: f32[32,512], index: 1, kind: input, shape index: {}]   ;;  %s492_s2 = inlined_call_operand.vmem [shape: f32[1,512], index: 2, kind: input, shape index: {}]   ;;  %s493_s3 = inlined_call_operand.hbm [shape: f32[16,512], index: 3, kind: output, shape index: {}]  }
   0x1   :  { %9 = vsyncpa [#allocation7], 0 }
   0x2   :  { %10 = vsyncpa [#allocation5], 0  ;;  %s417_s12 = smov [#allocation3]   ;;  %s345_s16 = scalar_lea.hbm %s490_s0, 256 }
   0x3   :  { %s16_s13 = sshll.u32 %s417_s12, 4  ;;  %p346_p0 = scmp.ne.s32.totalorder %s490_s0, %s345_s16  ;;  %s17_s13 = int_to_ptr.vmem [resolvable:$true] %s16_s13 }
   0x4   :  { %p349_p1 = scmp.lt.u32.totalorder %s345_s16, %s490_s0 }
   0x6   :  { %p351_p2 = pnand %p349_p1, %p346_p0 }
   0x8   :  { %354 = shalt.err (!%p351_p2)
}
   0x9   :  { %s355_s21 = scalar_lea.vmem %s17_s13, 256  ;;  %p360_p4 = scmp.lt.s32.totalorder %s17_s13, %s17_s13 }
   0xa   :  { %p356_p3 = scmp.ne.s32.totalorder %s17_s13, %s355_s21  ;;  %p361_p5 = scmp.lt.s32.totalorder %s355_s21, %s355_s21 }
   0xc   :  { %p362_p6 = por %p361_p5, %p360_p4 }
   0xe   :  { %p363_p7 = pnand %p362_p6, %p356_p3 }
  0x10   :  { %366 = shalt.err (!%p363_p7)
}
  0x11   :  { %s418_s22 = smov 128   ;;  %s419_s23 = smov 8  }
  0x12   :  { %22 = dma.hbm_to_vmem [thread:$0]  %s490_s0, 256, %s17_s13, [#allocation4], %s418_s22, %s418_s22, %s419_s23  }
  0x13   :  { %s420_s26 = smov [#allocation6]   ;;  %s367_s30 = scalar_lea.hbm %s491_s1, 2048 }
  0x14   :  { %s28_s27 = sshll.u32 %s420_s26, 4  ;;  %p368_p8 = scmp.ne.s32.totalorder %s491_s1, %s367_s30  ;;  %s29_s27 = int_to_ptr.vmem [resolvable:$true] %s28_s27 }
  0x15   :  { %p371_p9 = scmp.lt.u32.totalorder %s367_s30, %s491_s1 }
  0x17   :  { %p373_p10 = pnand %p371_p9, %p368_p8 }
  0x19   :  { %376 = shalt.err (!%p373_p10)
}
  0x1a   :  { %s377_s8 = scalar_lea.vmem %s29_s27, 2048  ;;  %p382_p12 = scmp.lt.s32.totalorder %s29_s27, %s29_s27 }
  0x1b   :  { %p378_p11 = scmp.ne.s32.totalorder %s29_s27, %s377_s8  ;;  %p383_p13 = scmp.lt.s32.totalorder %s377_s8, %s377_s8 }
  0x1d   :  { %p384_p0 = por %p383_p13, %p382_p12 }
  0x1f   :  { %p385_p1 = pnand %p384_p0, %p378_p11 }
  0x21   :  { %388 = shalt.err (!%p385_p1)
}
  0x22   :  { %s421_s0 = smov 512   ;;  %s422_s9 = smov 32  }
  0x23   :  { %34 = dma.hbm_to_vmem [thread:$0]  %s491_s1, 2048, %s29_s27, [#allocation7], %s421_s0, %s421_s0, %s422_s9  }
  0x24   :  { %411 = dma.done.wait [#allocation4], 256  }
  0x25   :  { %412 = vsyncadd [#allocation4], 4294967040 }
  0x26   :  { %413 = dma.done.wait [#allocation7], 2048  }
  0x27   :  { %414 = vsyncadd [#allocation7], 4294965248  ;;  %v423_v0 = vmov 0.0   ;;  %v88_v1 = vld [vmem:[#allocation6 + $0x8] sm:$0xff]  ;;  %v90_v3 = vld [vmem:[#allocation6 + $0x18] sm:$0xff]  ;;  %vm103_vm0 = vcmask 261120   ;;  %v49_v27 = vlaneseq }
  0x28   :  { %174 = vmatprep.mubr.f32.mxu0 %v423_v0  ;;  %251 = vmatprep.mubr.f32.mxu1 %v423_v0  ;;  %v92_v2 = vld [vmem:[#allocation6 + $0x28] sm:$0xff]  ;;  %v94_v5 = vld [vmem:[#allocation6 + $0x38] sm:$0xff]  ;;  %v87_v6 = vld [vmem:[#allocation6] sm:$0xff] }
  0x29   :  { %v321_v4 = vpack.c.bf16 %v92_v2, %v88_v1  ;;  %v91_v7 = vld [vmem:[#allocation6 + $0x20] sm:$0xff]  ;;  %v329_v8 = vpack.c.bf16 %v94_v5, %v90_v3  ;;  %v89_v10 = vld [vmem:[#allocation6 + $0x10] sm:$0xff]  ;;  %v96_v12 = vld [vmem:[#allocation6 + $0x48] sm:$0xff]  ;;  %v50_v28 = vshrl.u32 %v49_v27, 7 }
  0x2a   :  { %v323_v9 = vpack.c.bf16 %v91_v7, %v87_v6  ;;  %v93_v11 = vld [vmem:[#allocation6 + $0x30] sm:$0xff]  ;;  %v100_v14 = vld [vmem:[#allocation6 + $0x68] sm:$0xff]  ;;  %v98_v15 = vld [vmem:[#allocation6 + $0x58] sm:$0xff] }
  0x2b   :  { %322 = vmatprep.subr.bf16.mxu0 %v321_v4  ;;  %v331_v13 = vpack.c.bf16 %v93_v11, %v89_v10  ;;  %v102_v16 = vld [vmem:[#allocation6 + $0x78] sm:$0xff]  ;;  %330 = vmatprep.subr.bf16.mxu1 %v329_v8  ;;  %v325_v17 = vpack.c.bf16 %v100_v14, %v96_v12  ;;  %v95_v19 = vld [vmem:[#allocation6 + $0x40] sm:$0xff]  ;;  %v97_v21 = vld [vmem:[#allocation6 + $0x50] sm:$0xff]  ;;  %v51_v29 = vsub.s32 0, %v50_v28  ;;  %v59_v31 = vsub.s32 2, %v50_v28 }
  0x2c   :  { %324 = vmatpush1.bf16.msra.mxu0 %v323_v9  ;;  %v333_v18 = vpack.c.bf16 %v102_v16, %v98_v15  ;;  %v99_v20 = vld [vmem:[#allocation6 + $0x60] sm:$0xff]  ;;  %v101_v23 = vld [vmem:[#allocation6 + $0x70] sm:$0xff]  ;;  %v86_v26 = vld [vmem:[#allocation3 + $0x8] sm:$0xff]  ;;  %v55_v32 = vsub.s32 1, %v50_v28  ;;  %v63_v33 = vsub.s32 3, %v50_v28 }
  0x2d   :  { %332 = vmatpush1.bf16.msra.mxu1 %v331_v13  ;;  %v327_v22 = vpack.c.bf16 %v99_v20, %v95_v19  ;;  %326 = vmatprep.subr.bf16.mxu0 %v325_v17  ;;  %v335_v24 = vpack.c.bf16 %v101_v23, %v97_v21  ;;  %v85_v25 = vld [vmem:[#allocation3] sm:$0xff] }
  0x2e   :  { %334 = vmatprep.subr.bf16.mxu1 %v333_v18  ;;  %v47_v30 = vld [vmem:[%s492_s2] sm:$0xf]  ;;  %s424_s2 = smov [#allocation8]  }
  0x2f   :  { %v52_v34 = vrot.slane %v47_v30, %v51_v29  ;;  %v60_v35 = vrot.slane %v47_v30, %v59_v31  ;;  %v56_v36 = vrot.slane %v47_v30, %v55_v32  ;;  %v64_v37 = vrot.slane %v47_v30, %v63_v33  ;;  %s304_s13 = sshll.u32 %s424_s2, 4  ;;  %s305_s13 = int_to_ptr.vmem [resolvable:$true] %s304_s13 }
  0x30   :  { %328 = vmatpush1.bf16.msra.mxu0 %v327_v22  ;;  %s389_s14 = scalar_lea.vmem %s305_s13, 1024  ;;  %p394_p3 = scmp.lt.s32.totalorder %s305_s13, %s305_s13 }
  0x31   :  { %336 = vmatpush1.bf16.msra.mxu1 %v335_v24  ;;  %p390_p2 = scmp.ne.s32.totalorder %s305_s13, %s389_s14  ;;  %p395_p4 = scmp.lt.s32.totalorder %s389_s14, %s389_s14 }
  0x33   :  { %317 = vmatmul.mubr.msk.f32.vlgmr.msra.gmra.mrb[0].mxu0 %vm103_vm0, %v85_v25  ;;  %p396_p5 = por %p395_p4, %p394_p3 }
  0x34   :  { %319 = vmatmul.mubr.msk.f32.vlgmr.msra.gmra.mrb[0].mxu1 %vm103_vm0, %v85_v25  ;;  %180 = vmatprep.mubr.f32.mxu0 %v423_v0 }
  0x35   :  { %257 = vmatprep.mubr.f32.mxu1 %v423_v0  ;;  %p397_p6 = pnand %p396_p5, %p390_p2 }
  0x37   :  { %318 = vmatmul.mubr.msk.f32.gmra.mrb[2].mxu0 %vm103_vm0, %v86_v26 }
  0x38   :  { %320 = vmatmul.mubr.msk.f32.gmra.mrb[2].mxu1 %vm103_vm0, %v86_v26 }
 0x106   :  { %v176_v38 = vpop.f32.mrb[0].mxu0 }
 0x107   :  { %v264_v39 = vadd.f32 %v176_v38, %v52_v34  ;;  %v253_v40 = vpop.f32.mrb[0].mxu1  ;;  %v178_v41 = vpop.f32.mrb[1].mxu0 }
 0x108   :  { %v266_v42 = vadd.f32 %v253_v40, %v60_v35  ;;  %v265_v43 = vadd.f32 %v178_v41, %v56_v36  ;;  %v255_v44 = vpop.f32.mrb[1].mxu1 }
 0x109   :  { %291 = vst [vmem:[#allocation8] sm:$0xff] %v264_v39  ;;  %v267_v45 = vadd.f32 %v255_v44, %v64_v37 }
 0x10a   :  { %293 = vst [vmem:[#allocation8 + $0x10] sm:$0xff] %v266_v42  ;;  %292 = vst [vmem:[#allocation8 + $0x8] sm:$0xff] %v265_v43  ;;  %v182_v46 = vpop.f32.mrb[2].mxu0 }
 0x10b   :  { %294 = vst [vmem:[#allocation8 + $0x18] sm:$0xff] %v267_v45  ;;  %v268_v47 = vadd.f32 %v182_v46, %v52_v34  ;;  %v259_v48 = vpop.f32.mrb[2].mxu1  ;;  %v184_v49 = vpop.f32.mrb[3].mxu0 }
 0x10c   :  { %v270_v50 = vadd.f32 %v259_v48, %v60_v35  ;;  %v269_v51 = vadd.f32 %v184_v49, %v56_v36  ;;  %v261_v52 = vpop.f32.mrb[3].mxu1 }
 0x10d   :  { %295 = vst [vmem:[#allocation8 + $0x20] sm:$0xff] %v268_v47  ;;  %v271_v53 = vadd.f32 %v261_v52, %v64_v37 }
 0x10e   :  { %297 = vst [vmem:[#allocation8 + $0x30] sm:$0xff] %v270_v50  ;;  %296 = vst [vmem:[#allocation8 + $0x28] sm:$0xff] %v269_v51 }
 0x10f   :  { %298 = vst [vmem:[#allocation8 + $0x38] sm:$0xff] %v271_v53 }
 0x110   :  { %400 = shalt.err (!%p397_p6)
}
 0x111   :  { %s401_s17 = scalar_lea.hbm %s493_s3, 1024 }
 0x112   :  { %p402_p7 = scmp.ne.s32.totalorder %s493_s3, %s401_s17  ;;  %p405_p8 = scmp.lt.u32.totalorder %s401_s17, %s493_s3 }
 0x114   :  { %p407_p9 = pnand %p405_p8, %p402_p7 }
 0x116   :  { %410 = shalt.err (!%p407_p9)
}
 0x117   :  { %310 = dma.vmem_to_hbm [thread:$0]  %s305_s13, 1024, %s493_s3, [#allocation5], %s421_s0, %s421_s0, %s422_s9  }
 0x118   :  { %415 = dma.done.wait [#allocation5], 1024  }
 0x119   :  { %416 = vsyncadd [#allocation5], 4294966272 }
 0x11a   :  { %314 = vsyncpa [#allocation4], 1 }
 0x11b   :  { %315 = vsyncpa [#allocation7], 1 }
 0x11c   :  { %316 = vsyncpa [#allocation5], 1 }

</bundles_post_ra>
